<compile_context>
chip_gen: v7x
topology: tpu7x:2x2x1
jax: 0.10.0
libtpu: 0.0.40
codegen_flags: <defaults>
</compile_context>

<pallas_src>
import functools

import jax
import jax.numpy as jnp
from jax.experimental import pallas as pl
from jax.experimental.pallas import tpu as pltpu


# ---------------------------------------------------------------------------
# Exact GELU (erf form, like torch.nn.GELU() default).
# erf is evaluated with the Abramowitz & Stegun 7.1.26 rational polynomial
# (|abs error| <= 1.5e-7) so it lowers with only VPU/EUP elementwise ops.
# ---------------------------------------------------------------------------
def _erf_f32(x):
    a1 = 0.254829592
    a2 = -0.284496736
    a3 = 1.421413741
    a4 = -1.453152027
    a5 = 1.061405429
    p = 0.3275911
    ax = jnp.abs(x)
    t = 1.0 / (1.0 + p * ax)
    poly = ((((a5 * t + a4) * t + a3) * t + a2) * t + a1) * t
    y = 1.0 - poly * jnp.exp(-ax * ax)
    return jnp.where(x < 0, -y, y)


def _gelu_exact_f32(x):
    return 0.5 * x * (1.0 + _erf_f32(x * 0.7071067811865476))


# ---------------------------------------------------------------------------
# Fused FFN kernel for one tile of rows.
#   x_ref : (TM, Dp)   input rows (input dtype)
#   w1_ref: (Dp, Hp)   first Linear weight, pre-transposed, matmul dtype (bf16)
#   b1_ref: (1, Hp)    first Linear bias (f32)
#   w2_ref: (Hp, Dp)   second Linear weight, pre-transposed, matmul dtype (bf16)
#   b2_ref: (1, Dp)    second Linear bias (f32)
#   o_ref : (TM, Dp)   output rows
# ---------------------------------------------------------------------------
def ffn_kernel(x_ref, w1_ref, b1_ref, w2_ref, b2_ref, o_ref, *, matmul_dtype):
    x = x_ref[...].astype(matmul_dtype)

    # Linear(dim, hidden_dim): bf16 operands, f32 accumulation on the MXU.
    h = jnp.dot(x, w1_ref[...], preferred_element_type=jnp.float32) + b1_ref[...]

    # Exact (erf) GELU in f32 on the VPU/EUP.
    h = _gelu_exact_f32(h)

    # Dropout(p=0.0) is the identity — nothing to do.
    # Linear(hidden_dim, dim).
    out = jnp.dot(h.astype(matmul_dtype), w2_ref[...],
                  preferred_element_type=jnp.float32) + b2_ref[...]
    o_ref[...] = out.astype(o_ref.dtype)


def _round_up(x, m):
    return ((x + m - 1) // m) * m


def feedforward_forward(x, w1, b1, w2, b2, *,
                        tile_rows=512,
                        matmul_dtype=jnp.bfloat16,
                        vmem_budget_bytes=32 * 1024 * 1024):
    """FeedForward forward pass.

    x : (B, S, D)
    w1: (H, D)  torch nn.Linear(dim, hidden_dim).weight layout
    b1: (H,)
    w2: (D, H)  torch nn.Linear(hidden_dim, dim).weight layout
    b2: (D,)
    """
    B, S, D = x.shape
    H, D1 = w1.shape
    assert D1 == D and w2.shape == (D, H) and b1.shape == (H,) and b2.shape == (D,)
    N = B * S

    # Lane-dense padding of feature dims (multiples of 128): avoids masked
    # vst.msk partial stores and sub-vreg MXU N; padded region is exact zeros.
    Dp = _round_up(D, 128)
    Hp = _round_up(H, 128)

    # Row tile: large (MXU M-dim filled, few grid steps), aligned for the
    # sublane packing of the activation dtype, shrunk to fit the VMEM budget.
    row_align = 16 if x.dtype == jnp.bfloat16 else 8
    tm = max(row_align, _round_up(min(tile_rows, N), row_align))

    xb = jnp.dtype(x.dtype).itemsize
    wb = jnp.dtype(matmul_dtype).itemsize

    def _vmem_bytes(t):
        return (2 * t * Dp * xb            # x tiles (double-buffered)
                + 2 * t * Dp * xb          # out tiles (double-buffered)
                + 2 * (Dp * Hp + Hp * Dp) * wb   # both weights (double-buffered)
                + 2 * (Hp + Dp) * 4        # biases
                + t * Hp * 4)              # f32 intermediate activations
    while _vmem_bytes(tm) > vmem_budget_bytes and tm > row_align:
        tm = max(row_align, tm // 2)
    # TODO(synk): for very large D/H where the (Dp,Hp)+(Hp,Dp) weights no
    # longer fit VMEM (esp. v7x 64 MiB), add column/K grid axes with an
    # "arbitrary" reduction axis and a VMEM f32 accumulator (P3 pattern).

    # Pad rows so the tile choice is independent of B*S; padded rows are
    # computed and discarded (zero inputs -> finite values, no NaNs).
    Np = _round_up(N, tm)

    x2 = jnp.pad(x.reshape(N, D), ((0, Np - N), (0, Dp - D)))
    w1t = jnp.pad(w1.T, ((0, Dp - D), (0, Hp - H))).astype(matmul_dtype)  # (Dp, Hp)
    w2t = jnp.pad(w2.T, ((0, Hp - H), (0, Dp - D))).astype(matmul_dtype)  # (Hp, Dp)
    b1p = jnp.pad(b1, (0, Hp - H)).astype(jnp.float32).reshape(1, Hp)
    b2p = jnp.pad(b2, (0, Dp - D)).astype(jnp.float32).reshape(1, Dp)

    grid = (Np // tm,)

    cost = pl.CostEstimate(
        flops=4 * Np * Dp * Hp,                       # two (Np,Dp)x(Dp,Hp)-class matmuls
        transcendentals=Np * Hp,                      # one exp per GELU element
        bytes_accessed=(2 * Np * Dp * xb              # x in + out
                        + (Dp * Hp + Hp * Dp) * wb    # weights
                        + (Hp + Dp) * 4),             # biases
    )

    kernel = functools.partial(ffn_kernel, matmul_dtype=matmul_dtype)

    out2 = pl.pallas_call(
        kernel,
        out_shape=jax.ShapeDtypeStruct((Np, Dp), x.dtype),
        grid_spec=pltpu.PrefetchScalarGridSpec(
            num_scalar_prefetch=0,
            grid=grid,
            in_specs=[
                pl.BlockSpec((tm, Dp), lambda i: (i, 0)),   # x row tile
                pl.BlockSpec((Dp, Hp), lambda i: (0, 0)),   # W1^T (resident)
                pl.BlockSpec((1, Hp), lambda i: (0, 0)),    # b1
                pl.BlockSpec((Hp, Dp), lambda i: (0, 0)),   # W2^T (resident)
                pl.BlockSpec((1, Dp), lambda i: (0, 0)),    # b2
            ],
            out_specs=pl.BlockSpec((tm, Dp), lambda i: (i, 0)),
        ),
        compiler_params=pltpu.CompilerParams(
            dimension_semantics=("parallel",),              # megacore-sharded on v7x
            vmem_limit_bytes=48 * 1024 * 1024,
        ),
        cost_estimate=cost,
    )(x2, w1t, b1p, w2t, b2p)

    return out2[:N, :D].reshape(B, S, D)


if __name__ == "__main__":
    key = jax.random.PRNGKey(0)
    B, S, D, H = 2, 8, 32, 64  # dim=32, hidden_dim=64

    kx, kw1, kb1, kw2, kb2 = jax.random.split(key, 5)
    x = jax.random.normal(kx, (B, S, D), dtype=jnp.float32)

    # FeedForward params (torch layout), deterministic synthetic init.
    w1 = jax.random.normal(kw1, (H, D), dtype=jnp.float32) * 0.02
    b1 = jax.random.normal(kb1, (H,), dtype=jnp.float32) * 0.02
    w2 = jax.random.normal(kw2, (D, H), dtype=jnp.float32) * 0.02
    b2 = jax.random.normal(kb2, (D,), dtype=jnp.float32) * 0.02

    out = feedforward_forward(x, w1, b1, w2, b2)
    jax.block_until_ready(out)

    # Pure-JAX f32 reference (exact-erf GELU, dropout p=0 is identity).
    h_ref = jax.nn.gelu(x @ w1.T + b1, approximate=False)
    ref = h_ref @ w2.T + b2

    # Tolerance loosened because the kernel feeds the MXU bf16 operands
    # (f32 accumulation), as recommended for v5e/v6e/v7x throughput.
    assert jnp.allclose(out, ref, atol=2e-2, rtol=2e-2), "mismatch vs reference"

    print("KERNEL_OK")
</pallas_src>

<mosaic_0001>
module attributes {stable_mosaic.version = 11 : i64} {
  func.func @ffn_kernel(%arg0: i32, %arg1: memref<16x128xf32, #tpu.memory_space<vmem>>, %arg2: memref<128x128xbf16, #tpu.memory_space<vmem>>, %arg3: memref<1x128xf32, #tpu.memory_space<vmem>>, %arg4: memref<128x128xbf16, #tpu.memory_space<vmem>>, %arg5: memref<1x128xf32, #tpu.memory_space<vmem>>, %arg6: memref<16x128xf32, #tpu.memory_space<vmem>>) attributes {dimension_semantics = [#tpu.dimension_semantics<parallel>], iteration_bounds = array<i64: 1>, scalar_prefetch = 0 : i64, scratch_operands = 0 : i64, tpu.core_type = #tpu.core_type<tc>, window_params = [{transform_indices = @transform_0, window_bounds = array<i64: 16, 128>}, {pipeline_mode = #tpu.pipeline_mode<synchronous>, transform_indices = @transform_1, window_bounds = array<i64: 128, 128>}, {pipeline_mode = #tpu.pipeline_mode<synchronous>, transform_indices = @transform_2, window_bounds = array<i64: 1, 128>}, {pipeline_mode = #tpu.pipeline_mode<synchronous>, transform_indices = @transform_3, window_bounds = array<i64: 128, 128>}, {pipeline_mode = #tpu.pipeline_mode<synchronous>, transform_indices = @transform_4, window_bounds = array<i64: 1, 128>}, {transform_indices = @transform_5, window_bounds = array<i64: 16, 128>}]} {
    %c0 = arith.constant 0 : index
    %c0_0 = arith.constant 0 : index
    %0 = vector.load %arg1[%c0, %c0_0] : memref<16x128xf32, #tpu.memory_space<vmem>>, vector<16x128xf32>
    %1 = arith.truncf %0 : vector<16x128xf32> to vector<16x128xbf16>
    %c0_1 = arith.constant 0 : index
    %c0_2 = arith.constant 0 : index
    %2 = vector.load %arg2[%c0_1, %c0_2] : memref<128x128xbf16, #tpu.memory_space<vmem>>, vector<128x128xbf16>
    %cst = arith.constant dense<0.000000e+00> : vector<16x128xf32>
    %3 = tpu.matmul %1, %2, %cst {dimension_numbers = #tpu.dot_dimension_numbers<[1], [0], [0], [1], [0, 0, 1, 1], [], []>} : vector<16x128xbf16>, vector<128x128xbf16>, vector<16x128xf32> -> vector<16x128xf32>
    %c0_3 = arith.constant 0 : index
    %c0_4 = arith.constant 0 : index
    %4 = vector.load %arg3[%c0_3, %c0_4] : memref<1x128xf32, #tpu.memory_space<vmem>>, vector<1x128xf32>
    %5 = vector.broadcast %4 : vector<1x128xf32> to vector<16x128xf32>
    %6 = arith.addf %3, %5 : vector<16x128xf32>
    %cst_5 = arith.constant 5.000000e-01 : f32
    %7 = vector.broadcast %cst_5 : f32 to vector<16x128xf32>
    %8 = arith.mulf %7, %6 : vector<16x128xf32>
    %cst_6 = arith.constant 0.707106769 : f32
    %9 = vector.broadcast %cst_6 : f32 to vector<16x128xf32>
    %10 = arith.mulf %6, %9 : vector<16x128xf32>
    %11 = math.absf %10 : vector<16x128xf32>
    %cst_7 = arith.constant 0.327591091 : f32
    %12 = vector.broadcast %cst_7 : f32 to vector<16x128xf32>
    %13 = arith.mulf %12, %11 : vector<16x128xf32>
    %cst_8 = arith.constant 1.000000e+00 : f32
    %14 = vector.broadcast %cst_8 : f32 to vector<16x128xf32>
    %15 = arith.addf %14, %13 : vector<16x128xf32>
    %cst_9 = arith.constant 1.000000e+00 : f32
    %16 = vector.broadcast %cst_9 : f32 to vector<16x128xf32>
    %17 = arith.divf %16, %15 : vector<16x128xf32>
    %cst_10 = arith.constant 1.06140542 : f32
    %18 = vector.broadcast %cst_10 : f32 to vector<16x128xf32>
    %19 = arith.mulf %18, %17 : vector<16x128xf32>
    %cst_11 = arith.constant -1.45315206 : f32
    %20 = vector.broadcast %cst_11 : f32 to vector<16x128xf32>
    %21 = arith.addf %19, %20 : vector<16x128xf32>
    %22 = arith.mulf %21, %17 : vector<16x128xf32>
    %cst_12 = arith.constant 1.42141378 : f32
    %23 = vector.broadcast %cst_12 : f32 to vector<16x128xf32>
    %24 = arith.addf %22, %23 : vector<16x128xf32>
    %25 = arith.mulf %24, %17 : vector<16x128xf32>
    %cst_13 = arith.constant -0.284496725 : f32
    %26 = vector.broadcast %cst_13 : f32 to vector<16x128xf32>
    %27 = arith.addf %25, %26 : vector<16x128xf32>
    %28 = arith.mulf %27, %17 : vector<16x128xf32>
    %cst_14 = arith.constant 0.254829586 : f32
    %29 = vector.broadcast %cst_14 : f32 to vector<16x128xf32>
    %30 = arith.addf %28, %29 : vector<16x128xf32>
    %31 = arith.mulf %30, %17 : vector<16x128xf32>
    %cst_15 = arith.constant 0.000000e+00 : f32
    %32 = vector.broadcast %cst_15 : f32 to vector<16x128xf32>
    %33 = arith.subf %32, %11 : vector<16x128xf32>
    %34 = arith.mulf %33, %11 : vector<16x128xf32>
    %35 = math.exp %34 : vector<16x128xf32>
    %36 = arith.mulf %31, %35 : vector<16x128xf32>
    %cst_16 = arith.constant 1.000000e+00 : f32
    %37 = vector.broadcast %cst_16 : f32 to vector<16x128xf32>
    %38 = arith.subf %37, %36 : vector<16x128xf32>
    %cst_17 = arith.constant 0.000000e+00 : f32
    %39 = vector.broadcast %cst_17 : f32 to vector<16x128xf32>
    %40 = arith.cmpf olt, %10, %39 : vector<16x128xf32>
    %cst_18 = arith.constant 0.000000e+00 : f32
    %41 = vector.broadcast %cst_18 : f32 to vector<16x128xf32>
    %42 = arith.subf %41, %38 : vector<16x128xf32>
    %43 = arith.select %40, %42, %38 : vector<16x128xi1>, vector<16x128xf32>
    %cst_19 = arith.constant 1.000000e+00 : f32
    %44 = vector.broadcast %cst_19 : f32 to vector<16x128xf32>
    %45 = arith.addf %44, %43 : vector<16x128xf32>
    %46 = arith.mulf %8, %45 : vector<16x128xf32>
    %47 = arith.truncf %46 : vector<16x128xf32> to vector<16x128xbf16>
    %c0_20 = arith.constant 0 : index
    %c0_21 = arith.constant 0 : index
    %48 = vector.load %arg4[%c0_20, %c0_21] : memref<128x128xbf16, #tpu.memory_space<vmem>>, vector<128x128xbf16>
    %cst_22 = arith.constant dense<0.000000e+00> : vector<16x128xf32>
    %49 = tpu.matmul %47, %48, %cst_22 {dimension_numbers = #tpu.dot_dimension_numbers<[1], [0], [0], [1], [0, 0, 1, 1], [], []>} : vector<16x128xbf16>, vector<128x128xbf16>, vector<16x128xf32> -> vector<16x128xf32>
    %c0_23 = arith.constant 0 : index
    %c0_24 = arith.constant 0 : index
    %50 = vector.load %arg5[%c0_23, %c0_24] : memref<1x128xf32, #tpu.memory_space<vmem>>, vector<1x128xf32>
    %51 = vector.broadcast %50 : vector<1x128xf32> to vector<16x128xf32>
    %52 = arith.addf %49, %51 : vector<16x128xf32>
    %c0_25 = arith.constant 0 : index
    %c0_26 = arith.constant 0 : index
    %53 = vector.load %arg6[%c0_25, %c0_26] : memref<16x128xf32, #tpu.memory_space<vmem>>, vector<16x128xf32>
    tpu.vector_store %arg6[%c0_25, %c0_26], %52 {strides = array<i32>} : memref<16x128xf32, #tpu.memory_space<vmem>>, vector<16x128xf32>,
    return
  }
  func.func @transform_0(%arg0: i32) -> (i32, i32) {
    %c0_i32 = arith.constant 0 : i32
    %c0_i32_0 = arith.constant 0 : i32
    return %arg0, %c0_i32 : i32, i32
  }
  func.func @transform_1(%arg0: i32) -> (i32, i32) {
    %c0_i32 = arith.constant 0 : i32
    %c0_i32_0 = arith.constant 0 : i32
    %c0_i32_1 = arith.constant 0 : i32
    return %c0_i32, %c0_i32_0 : i32, i32
  }
  func.func @transform_2(%arg0: i32) -> (i32, i32) {
    %c0_i32 = arith.constant 0 : i32
    %c0_i32_0 = arith.constant 0 : i32
    %c0_i32_1 = arith.constant 0 : i32
    return %c0_i32, %c0_i32_0 : i32, i32
  }
  func.func @transform_3(%arg0: i32) -> (i32, i32) {
    %c0_i32 = arith.constant 0 : i32
    %c0_i32_0 = arith.constant 0 : i32
    %c0_i32_1 = arith.constant 0 : i32
    return %c0_i32, %c0_i32_0 : i32, i32
  }
  func.func @transform_4(%arg0: i32) -> (i32, i32) {
    %c0_i32 = arith.constant 0 : i32
    %c0_i32_0 = arith.constant 0 : i32
    %c0_i32_1 = arith.constant 0 : i32
    return %c0_i32, %c0_i32_0 : i32, i32
  }
  func.func @transform_5(%arg0: i32) -> (i32, i32) {
    %c0_i32 = arith.constant 0 : i32
    %c0_i32_0 = arith.constant 0 : i32
    return %arg0, %c0_i32 : i32, i32
  }
}

</mosaic_0001>

<bundles_post_ra>
// kernel: tpu_custom_call.1
= control target key start
LH: loop header
LB: loop body
LE: loop exit
PB: predicated region body
PF: predicated region fallthrough
CT: control target
= control target key end

     0   :  { %10 = vsyncpa [#allocation3], 0  ;;  %s675_s0 = inlined_call_operand.hbm [shape: f32[16,128], index: 0, kind: input, shape index: {}]   ;;  %s676_s1 = inlined_call_operand.hbm [shape: bf16[128,128], index: 1, kind: input, shape index: {}]   ;;  %s677_s2 = inlined_call_operand.vmem [shape: f32[1,128], index: 2, kind: input, shape index: {}]   ;;  %s678_s3 = inlined_call_operand.hbm [shape: bf16[128,128], index: 3, kind: input, shape index: {}]   ;;  %s679_s4 = inlined_call_operand.vmem [shape: f32[1,128], index: 4, kind: input, shape index: {}]   ;;  %s680_s5 = inlined_call_operand.hbm [shape: f32[16,128], index: 5, kind: output, shape index: {}]  }
   0x1   :  { %11 = vsyncpa [#allocation6], 0 }
   0x2   :  { %12 = vsyncpa [#allocation4], 0  ;;  %s569_s18 = smov [#allocation5]   ;;  %s475_s22 = scalar_lea.hbm %s676_s1, 1024 }
   0x3   :  { %s30_s19 = sshll.u32 %s569_s18, 4  ;;  %p476_p0 = scmp.ne.s32.totalorder %s676_s1, %s475_s22  ;;  %s31_s19 = int_to_ptr.vmem [resolvable:$true] %s30_s19 }
   0x4   :  { %p479_p1 = scmp.lt.u32.totalorder %s475_s22, %s676_s1 }
   0x6   :  { %p481_p2 = pnand %p479_p1, %p476_p0 }
   0x8   :  { %484 = shalt.err (!%p481_p2)
}
   0x9   :  { %s485_s27 = scalar_lea.vmem %s31_s19, 1024  ;;  %p490_p4 = scmp.lt.s32.totalorder %s31_s19, %s31_s19 }
   0xa   :  { %p486_p3 = scmp.ne.s32.totalorder %s31_s19, %s485_s27  ;;  %p491_p5 = scmp.lt.s32.totalorder %s485_s27, %s485_s27 }
   0xc   :  { %p492_p6 = por %p491_p5, %p490_p4 }
   0xe   :  { %p493_p7 = pnand %p492_p6, %p486_p3 }
  0x10   :  { %496 = shalt.err (!%p493_p7)
}
  0x11   :  { %s570_s28 = smov 64   ;;  %s571_s29 = smov 4  }
  0x12   :  { %36 = dma.hbm_to_vmem [thread:$0]  %s676_s1, 1024, %s31_s19, [#allocation6], %s570_s28, %s570_s28, %s571_s29  }
  0x13   :  { %s572_s7 = smov [#allocation2]   ;;  %s497_s11 = scalar_lea.hbm %s675_s0, 256 }
  0x14   :  { %s18_s8 = sshll.u32 %s572_s7, 4  ;;  %p498_p8 = scmp.ne.s32.totalorder %s675_s0, %s497_s11  ;;  %s19_s8 = int_to_ptr.vmem [resolvable:$true] %s18_s8 }
  0x15   :  { %p501_p9 = scmp.lt.u32.totalorder %s497_s11, %s675_s0 }
  0x17   :  { %p503_p10 = pnand %p501_p9, %p498_p8 }
  0x19   :  { %506 = shalt.err (!%p503_p10)
}
  0x1a   :  { %s507_s16 = scalar_lea.vmem %s19_s8, 256  ;;  %p512_p12 = scmp.lt.s32.totalorder %s19_s8, %s19_s8 }
  0x1b   :  { %p508_p11 = scmp.ne.s32.totalorder %s19_s8, %s507_s16  ;;  %p513_p13 = scmp.lt.s32.totalorder %s507_s16, %s507_s16 }
  0x1d   :  { %p514_p0 = por %p513_p13, %p512_p12 }
  0x1f   :  { %p515_p1 = pnand %p514_p0, %p508_p11 }
  0x21   :  { %518 = shalt.err (!%p515_p1)
}
  0x22   :  { %s573_s1 = smov 128   ;;  %s574_s17 = smov 8  }
  0x23   :  { %24 = dma.hbm_to_vmem [thread:$0]  %s675_s0, 256, %s19_s8, [#allocation3], %s573_s1, %s573_s1, %s574_s17  }
  0x24   :  { %s575_s20 = smov [#allocation7]   ;;  %s519_s24 = scalar_lea.hbm %s678_s3, 1024 }
  0x25   :  { %s44_s21 = sshll.u32 %s575_s20, 4  ;;  %p520_p2 = scmp.ne.s32.totalorder %s678_s3, %s519_s24  ;;  %s45_s21 = int_to_ptr.vmem [resolvable:$true] %s44_s21 }
  0x26   :  { %p523_p3 = scmp.lt.u32.totalorder %s519_s24, %s678_s3 }
  0x28   :  { %p525_p4 = pnand %p523_p3, %p520_p2 }
  0x2a   :  { %528 = shalt.err (!%p525_p4)
}
  0x2b   :  { %s529_s6 = scalar_lea.vmem %s45_s21, 1024  ;;  %p534_p6 = scmp.lt.s32.totalorder %s45_s21, %s45_s21 }
  0x2c   :  { %p530_p5 = scmp.ne.s32.totalorder %s45_s21, %s529_s6  ;;  %p535_p7 = scmp.lt.s32.totalorder %s529_s6, %s529_s6 }
  0x2e   :  { %p536_p8 = por %p535_p7, %p534_p6 }
  0x30   :  { %p537_p9 = pnand %p536_p8, %p530_p5 }
  0x32   :  { %540 = shalt.err (!%p537_p9)
}
  0x33   :  { %50 = dma.hbm_to_vmem [thread:$0]  %s678_s3, 1024, %s45_s21, [#allocation6], %s570_s28, %s570_s28, %s571_s29  }
  0x34   :  { %563 = dma.done.wait [#allocation3], 256  }
  0x35   :  { %564 = vsyncadd [#allocation3], 4294967040 }
  0x36   :  { %565 = dma.done.wait [#allocation6], 2048  }
  0x37   :  { %566 = vsyncadd [#allocation6], 4294965248  ;;  %v576_v0 = vmov 0.0   ;;  %vm577_vm0 = vmmov 0   ;;  %v451_v1 = vld [vmem:[#allocation5] sm:$0xff]   ;;  %v452_v2 = vld [vmem:[#allocation5 + $0x8] sm:$0xff]  }
  0x38   :  { %401 = vmatprep.subr.bf16.mxu0 %v576_v0  ;;  %417 = vmatprep.mubr.msk.bf16.mxu0 %vm577_vm0, %v576_v0  ;;  %v453_v3 = vld [vmem:[#allocation5 + $0x10] sm:$0xff]   ;;  %v454_v4 = vld [vmem:[#allocation5 + $0x18] sm:$0xff]   ;;  %v455_v5 = vld [vmem:[#allocation5 + $0x20] sm:$0xff]   ;;  %s578_s8 = smov [#allocation8]  }
  0x39   :  { %421 = vmatprep.subr.bf16.mxu1 %v576_v0  ;;  %437 = vmatprep.mubr.msk.bf16.mxu1 %vm577_vm0, %v576_v0  ;;  %v456_v6 = vld [vmem:[#allocation5 + $0x28] sm:$0xff]   ;;  %v457_v7 = vld [vmem:[#allocation5 + $0x30] sm:$0xff]   ;;  %v458_v8 = vld [vmem:[#allocation5 + $0x38] sm:$0xff]   ;;  %s352_s9 = sshll.u32 %s578_s8, 4  ;;  %s353_s9 = int_to_ptr.vmem [resolvable:$true] %s352_s9 }
  0x3a   :  { %402 = vmatpush3.bf16.msra.mxu0 %v451_v1  ;;  %v63_v9 = vld [vmem:[#allocation2] sm:$0xff]  ;;  %v64_v10 = vld [vmem:[#allocation2 + $0x8] sm:$0xff]  ;;  %v459_v12 = vld [vmem:[#allocation7] sm:$0xff]   ;;  %s541_s10 = scalar_lea.vmem %s353_s9, 256  ;;  %p546_p11 = scmp.lt.s32.totalorder %s353_s9, %s353_s9 }
  0x3b   :  { %403 = vmatprep.subr.bf16.mxu0 %v576_v0  ;;  %v65_v11 = vpack.c.bf16 %v64_v10, %v63_v9  ;;  %422 = vmatpush3.bf16.msra.mxu1 %v459_v12  ;;  %v460_v13 = vld [vmem:[#allocation7 + $0x8] sm:$0xff]   ;;  %v461_v14 = vld [vmem:[#allocation7 + $0x10] sm:$0xff]   ;;  %v462_v15 = vld [vmem:[#allocation7 + $0x18] sm:$0xff]   ;;  %p542_p10 = scmp.ne.s32.totalorder %s353_s9, %s541_s10  ;;  %p547_p12 = scmp.lt.s32.totalorder %s541_s10, %s541_s10 }
  0x3c   :  { %423 = vmatprep.subr.bf16.mxu1 %v576_v0  ;;  %v463_v16 = vld [vmem:[#allocation7 + $0x20] sm:$0xff]   ;;  %v464_v17 = vld [vmem:[#allocation7 + $0x28] sm:$0xff]   ;;  %v465_v18 = vld [vmem:[#allocation7 + $0x30] sm:$0xff]  }
  0x3d   :  { %v466_v19 = vld [vmem:[#allocation7 + $0x38] sm:$0xff]   ;;  %v365_v20 = vld [vmem:[%s677_s2] ss:$0 sm:$0xff]  ;;  %p548_p13 = por %p547_p12, %p546_p11 }
  0x3e   :  { %404 = vmatpush3.bf16.msra.mxu0 %v452_v2 }
  0x3f   :  { %405 = vmatprep.subr.bf16.mxu0 %v576_v0  ;;  %424 = vmatpush3.bf16.msra.mxu1 %v460_v13  ;;  %p549_p0 = pnand %p548_p13, %p542_p10 }
  0x40   :  { %425 = vmatprep.subr.bf16.mxu1 %v576_v0 }
  0x42   :  { %406 = vmatpush3.bf16.msra.mxu0 %v453_v3 }
  0x43   :  { %407 = vmatprep.subr.bf16.mxu0 %v576_v0  ;;  %426 = vmatpush3.bf16.msra.mxu1 %v461_v14  ;;  %v374_v14 = vld [vmem:[%s679_s4] ss:$0 sm:$0xff] }
  0x44   :  { %427 = vmatprep.subr.bf16.mxu1 %v576_v0 }
  0x46   :  { %408 = vmatpush3.bf16.msra.mxu0 %v454_v4 }
  0x47   :  { %409 = vmatprep.subr.bf16.mxu0 %v576_v0  ;;  %428 = vmatpush3.bf16.msra.mxu1 %v462_v15 }
  0x48   :  { %429 = vmatprep.subr.bf16.mxu1 %v576_v0 }
  0x4a   :  { %410 = vmatpush3.bf16.msra.mxu0 %v455_v5 }
  0x4b   :  { %411 = vmatprep.subr.bf16.mxu0 %v576_v0  ;;  %430 = vmatpush3.bf16.msra.mxu1 %v463_v16 }
  0x4c   :  { %431 = vmatprep.subr.bf16.mxu1 %v576_v0 }
  0x4e   :  { %412 = vmatpush3.bf16.msra.mxu0 %v456_v6 }
  0x4f   :  { %413 = vmatprep.subr.bf16.mxu0 %v576_v0  ;;  %432 = vmatpush3.bf16.msra.mxu1 %v464_v17 }
  0x50   :  { %433 = vmatprep.subr.bf16.mxu1 %v576_v0 }
  0x52   :  { %414 = vmatpush3.bf16.msra.mxu0 %v457_v7 }
  0x53   :  { %415 = vmatprep.subr.bf16.mxu0 %v576_v0  ;;  %434 = vmatpush3.bf16.msra.mxu1 %v465_v18 }
  0x54   :  { %435 = vmatprep.subr.bf16.mxu1 %v576_v0 }
  0x56   :  { %416 = vmatpush3.bf16.msra.mxu0 %v458_v8 }
  0x57   :  { %436 = vmatpush3.bf16.msra.mxu1 %v466_v19 }
  0x59   :  { %418 = vmatmul.mubr.bf16.vlgmr.msra.gmra.mrb[0].mxu0 %v65_v11 }
 0x12c   :  { %v171_v21 = vpop.f32.mrb[0].mxu0 }
 0x12d   :  { %v172_v22 = vadd.f32 %v365_v20, %v171_v21  ;;  %v419_v23 = vpop.f32.mrb[1].mxu0 }
 0x12e   :  { %v174_v24 = vpop.f32.mrb[2].mxu0 }
 0x12f   :  { %v180_v25 = vmul.f32 0.70710677, %v172_v22  ;;  %v175_v26 = vadd.f32 %v365_v20, %v174_v24  ;;  %v420_v27 = vpop.f32.mrb[3].mxu0  ;;  %v178_v8 = vmul.f32 0.5, %v172_v22 }
 0x131   :  { %v182_v28 = vand.u32 2147483647, %v180_v25  ;;  %v181_v29 = vmul.f32 0.70710677, %v175_v26  ;;  %vm222_vm1 = vcmp.lt.f32.partialorder %v180_v25, 0.0  ;;  %v179_v9 = vmul.f32 0.5, %v175_v26 }
 0x133   :  { %v184_v30 = vmul.f32 0.3275911, %v182_v28  ;;  %v183_v31 = vand.u32 2147483647, %v181_v29  ;;  %v210_v35 = vsub.f32 0.0, %v182_v28  ;;  %vm223_vm2 = vcmp.lt.f32.partialorder %v181_v29, 0.0 }
 0x135   :  { %v186_v32 = vadd.f32 1.0, %v184_v30  ;;  %v185_v33 = vmul.f32 0.3275911, %v183_v31  ;;  %v211_v36 = vsub.f32 0.0, %v183_v31  ;;  %v212_v38 = vmul.f32 %v210_v35, %v182_v28 }
 0x137   :  { %467 = vrcp.f32 %v186_v32  ;;  %v187_v34 = vadd.f32 1.0, %v185_v33  ;;  %v213_v42 = vmul.f32 %v211_v36, %v183_v31  ;;  %v214_v43 = vmul.f32 1.442695, %v212_v38 }
 0x139   :  { %469 = vrcp.f32 %v187_v34  ;;  %v216_v48 = vmul.f32 1.442695, %v213_v42 }
 0x13a   :  { %471 = vpow2.f32 %v214_v43 }
 0x13b   :  { %473 = vpow2.f32 %v216_v48 }
 0x141   :  { %v468_v37 = vpop.eup %467 }
 0x142   :  { %v192_v39 = vmul.f32 1.0614054, %v468_v37 }
 0x143   :  { %v470_v40 = vpop.eup %469 }
 0x144   :  { %v194_v41 = vadd.f32 -1.4531521, %v192_v39  ;;  %v193_v44 = vmul.f32 1.0614054, %v470_v40  ;;  %v472_v59 = vpop.eup %471 }
 0x145   :  { %v474_v63 = vpop.eup %473 }
 0x146   :  { %v196_v45 = vmul.f32 %v468_v37, %v194_v41  ;;  %v195_v46 = vadd.f32 -1.4531521, %v193_v44 }
 0x148   :  { %v198_v47 = vadd.f32 1.4214138, %v196_v45  ;;  %v197_v49 = vmul.f32 %v470_v40, %v195_v46 }
 0x14a   :  { %v200_v50 = vmul.f32 %v468_v37, %v198_v47  ;;  %v199_v51 = vadd.f32 1.4214138, %v197_v49 }
 0x14c   :  { %v202_v52 = vadd.f32 -0.28449672, %v200_v50  ;;  %v201_v53 = vmul.f32 %v470_v40, %v199_v51 }
 0x14e   :  { %v204_v54 = vmul.f32 %v468_v37, %v202_v52  ;;  %v203_v55 = vadd.f32 -0.28449672, %v201_v53 }
 0x150   :  { %v206_v56 = vadd.f32 0.2548296, %v204_v54  ;;  %v205_v57 = vmul.f32 %v470_v40, %v203_v55 }
 0x152   :  { %v208_v58 = vmul.f32 %v468_v37, %v206_v56  ;;  %v207_v60 = vadd.f32 0.2548296, %v205_v57 }
 0x154   :  { %v218_v61 = vmul.f32 %v472_v59, %v208_v58  ;;  %v209_v62 = vmul.f32 %v470_v40, %v207_v60 }
 0x156   :  { %v220_v0 = vsub.f32 1.0, %v218_v61  ;;  %v219_v1 = vmul.f32 %v474_v63, %v209_v62 }
 0x158   :  { %v224_v2 = vsub.f32 0.0, %v220_v0  ;;  %v221_v3 = vsub.f32 1.0, %v219_v1 }
 0x15a   :  { %v226_v4 = vsel %vm222_vm1, %v224_v2, %v220_v0  ;;  %v225_v5 = vsub.f32 0.0, %v221_v3 }
 0x15b   :  { %v228_v6 = vadd.f32 1.0, %v226_v4 }
 0x15c   :  { %v227_v7 = vsel %vm223_vm2, %v225_v5, %v221_v3 }
 0x15d   :  { %v229_v10 = vadd.f32 1.0, %v227_v7  ;;  %v230_v11 = vmul.f32 %v228_v6, %v178_v8 }
 0x15f   :  { %v231_v12 = vmul.f32 %v229_v10, %v179_v9 }
 0x161   :  { %v232_v13 = vpack.c.bf16 %v231_v12, %v230_v11 }
 0x163   :  { %438 = vmatmul.mubr.bf16.vlgmr.msra.gmra.mrb[0].mxu1 %v232_v13 }
 0x236   :  { %v338_v15 = vpop.f32.mrb[0].mxu1 }
 0x237   :  { %v339_v16 = vadd.f32 %v374_v14, %v338_v15  ;;  %v439_v17 = vpop.f32.mrb[1].mxu1 }
 0x238   :  { %v341_v18 = vpop.f32.mrb[2].mxu1 }
 0x239   :  { %345 = vst [vmem:[#allocation8] sm:$0xff] %v339_v16  ;;  %v342_v19 = vadd.f32 %v374_v14, %v341_v18  ;;  %v440_v20 = vpop.f32.mrb[3].mxu1 }
 0x23b   :  { %346 = vst [vmem:[#allocation8 + $0x8] sm:$0xff] %v342_v19 }
 0x23c   :  { %552 = shalt.err (!%p549_p0)
}
 0x23d   :  { %s553_s12 = scalar_lea.hbm %s680_s5, 256 }
 0x23e   :  { %p554_p1 = scmp.ne.s32.totalorder %s680_s5, %s553_s12  ;;  %p557_p2 = scmp.lt.u32.totalorder %s553_s12, %s680_s5 }
 0x240   :  { %p559_p3 = pnand %p557_p2, %p554_p1 }
 0x242   :  { %562 = shalt.err (!%p559_p3)
}
 0x243   :  { %358 = dma.vmem_to_hbm [thread:$0]  %s353_s9, 256, %s680_s5, [#allocation4], %s573_s1, %s573_s1, %s574_s17  }
 0x244   :  { %567 = dma.done.wait [#allocation4], 256  }
 0x245   :  { %568 = vsyncadd [#allocation4], 4294967040 }
 0x246   :  { %362 = vsyncpa [#allocation3], 1 }
 0x247   :  { %363 = vsyncpa [#allocation6], 1 }
 0x248   :  { %364 = vsyncpa [#allocation4], 1 }

</bundles_post_ra>
